<compile_context>
chip_gen: v5e
topology: v5e:2x2
jax: 0.10.0
libtpu: 0.0.40
codegen_flags: <defaults>
</compile_context>

<pallas_src>
import jax
import jax.numpy as jnp
from jax.experimental import pallas as pl
from jax.experimental.pallas import tpu as pltpu

_SUBLANE = 8
_LANE = 128


def perceptron_kernel(x_ref, w_ref, b_ref, o_ref):
    # x_ref / o_ref : (block_rows, 128) lane-dense VMEM tiles of the batch.
    # w_ref / b_ref : (1, 1) f32 SMEM scalars (the Linear(1,1) weight / bias).
    w = w_ref[0, 0]
    b = b_ref[0, 0]
    # Pure VPU fma (f32 accumulation if x is low precision), cast on store so
    # the kernel is dtype-robust (bf16 inputs store correctly).
    o_ref[...] = (x_ref[...] * w + b).astype(o_ref.dtype)


def _pick_block_rows(rows, block_rows):
    """Rows per grid block: a multiple of 8 (or the full extent), capped so the
    grid has >= 2 steps whenever possible (v7x megacore sharding)."""
    if rows <= _SUBLANE:
        return rows  # single block == full dim (allowed even if < 8)
    half = _SUBLANE * pl.cdiv(pl.cdiv(rows, 2), _SUBLANE)
    br = min(block_rows, rows, half)
    br = max(_SUBLANE, (br // _SUBLANE) * _SUBLANE)
    return br


def perceptron_forward(x, weight, bias, *, block_rows=4096):
    """x: (N, 1), weight: (1, 1), bias: (1,)  ->  (N, 1) (same dtype as x)."""
    n, in_f = x.shape
    out_f = weight.shape[0]
    assert in_f == 1 and weight.shape == (1, 1) and out_f == 1, \
        "Perceptron is Linear(1, 1)"
    dtype = x.dtype

    # Weight / bias as (1,1) f32 SMEM scalars.
    w_smem = weight.reshape(1, 1).astype(jnp.float32)
    b_smem = bias.reshape(1, 1).astype(jnp.float32)

    xf = x.reshape(-1)                      # (N,1) -> (N,): free
    width = _LANE                           # lane-dense: unmasked full-lane vst
    bulk_rows = n // width
    bulk = bulk_rows * width
    tail = n - bulk

    out_bulk = None
    if bulk_rows > 0:
        x2d = (xf if tail == 0 else xf[:bulk]).reshape(bulk_rows, width)
        br = _pick_block_rows(bulk_rows, block_rows)
        out2d = pl.pallas_call(
            perceptron_kernel,
            out_shape=jax.ShapeDtypeStruct((bulk_rows, width), dtype),
            grid=(pl.cdiv(bulk_rows, br),),   # ragged last block masked by Pallas
            in_specs=[
                pl.BlockSpec((br, width), lambda i: (i, 0)),
                pl.BlockSpec(memory_space=pltpu.MemorySpace.SMEM),
                pl.BlockSpec(memory_space=pltpu.MemorySpace.SMEM),
            ],
            out_specs=pl.BlockSpec((br, width), lambda i: (i, 0)),
            compiler_params=pltpu.CompilerParams(
                dimension_semantics=("parallel",)),
        )(x2d, w_smem, b_smem)
        if tail == 0:
            # Fast path: zero extra HBM copies (no pad / slice / concat).
            return out2d.reshape(n, out_f)
        out_bulk = out2d.reshape(bulk)

    # Tail (< 128 elements): trivial fma in the wrapper.
    y_tail = (xf[bulk:].astype(jnp.float32) * w_smem[0, 0]
              + b_smem[0, 0]).astype(dtype)
    if out_bulk is None:
        return y_tail.reshape(n, out_f)
    return jnp.concatenate([out_bulk, y_tail]).reshape(n, out_f)


if __name__ == "__main__":
    key = jax.random.PRNGKey(0)
    kx, kw, kb = jax.random.split(key, 3)

    IN_F, OUT_F = 1, 1
    # Deterministic PyTorch-style uniform(-1/sqrt(in), 1/sqrt(in)) init.
    bound = 1.0 / (IN_F ** 0.5)
    weight = jax.random.uniform(kw, (OUT_F, IN_F), minval=-bound, maxval=bound,
                                dtype=jnp.float32)
    bias = jax.random.uniform(kb, (OUT_F,), minval=-bound, maxval=bound,
                              dtype=jnp.float32)

    fwd = jax.jit(perceptron_forward, static_argnames=("block_rows",))

    # Primary check: fast path (N % 128 == 0), multi-step "parallel" grid.
    N = 16384
    x = jax.random.normal(kx, (N, IN_F), dtype=jnp.float32)
    out = jax.block_until_ready(fwd(x, weight, bias))
    ref = x @ weight.T + bias
    assert out.shape == (N, OUT_F)
    assert jnp.allclose(out, ref, atol=1e-6, rtol=1e-6)

    # Secondary check: non-multiple batch with tiny blocks — exercises the
    # ragged last grid block, the bulk kernel path, and the <128-element tail.
    N2 = 5000
    x2 = jax.random.normal(jax.random.PRNGKey(1), (N2, IN_F), dtype=jnp.float32)
    out2 = jax.block_until_ready(fwd(x2, weight, bias, block_rows=8))
    ref2 = x2 @ weight.T + bias
    assert out2.shape == (N2, OUT_F)
    assert jnp.allclose(out2, ref2, atol=1e-6, rtol=1e-6)

    # Tiny batch (< 128): tail-only wrapper path.
    N3 = 8
    x3 = jax.random.normal(jax.random.PRNGKey(2), (N3, IN_F), dtype=jnp.float32)
    out3 = jax.block_until_ready(fwd(x3, weight, bias))
    ref3 = x3 @ weight.T + bias
    assert out3.shape == (N3, OUT_F)
    assert jnp.allclose(out3, ref3, atol=1e-6, rtol=1e-6)

    # bf16 robustness: explicit cast on the store, f32 accumulation in-kernel.
    N4 = 2048
    x4 = jax.random.normal(jax.random.PRNGKey(3), (N4, IN_F),
                           dtype=jnp.bfloat16)
    out4 = jax.block_until_ready(fwd(x4, weight, bias))
    ref4 = (x4.astype(jnp.float32) * weight[0, 0] + bias[0]
            ).astype(jnp.bfloat16).reshape(N4, OUT_F)
    assert out4.shape == (N4, OUT_F) and out4.dtype == jnp.bfloat16
    assert jnp.allclose(out4.astype(jnp.float32), ref4.astype(jnp.float32),
                        atol=1e-2, rtol=1e-2)

    print("KERNEL_OK")
</pallas_src>

<mosaic_0001>
module attributes {stable_mosaic.version = 11 : i64} {
  func.func @perceptron_kernel(%arg0: i32, %arg1: memref<64x128xf32, #tpu.memory_space<vmem>>, %arg2: memref<1x1xf32, #tpu.memory_space<smem>>, %arg3: memref<1x1xf32, #tpu.memory_space<smem>>, %arg4: memref<64x128xf32, #tpu.memory_space<vmem>>) attributes {dimension_semantics = [#tpu.dimension_semantics<parallel>], iteration_bounds = array<i64: 2>, scalar_prefetch = 0 : i64, scratch_operands = 0 : i64, tpu.core_type = #tpu.core_type<tc>, window_params = [{transform_indices = @transform_0, window_bounds = array<i64: 64, 128>}, {transform_indices = @transform_1, window_bounds = array<i64: 1, 1>}, {transform_indices = @transform_2, window_bounds = array<i64: 1, 1>}, {transform_indices = @transform_3, window_bounds = array<i64: 64, 128>}]} {
    %c0 = arith.constant 0 : index
    %c0_0 = arith.constant 0 : index
    %0 = memref.load %arg2[%c0, %c0_0] : memref<1x1xf32, #tpu.memory_space<smem>>
    %c0_1 = arith.constant 0 : index
    %c0_2 = arith.constant 0 : index
    %1 = memref.load %arg3[%c0_1, %c0_2] : memref<1x1xf32, #tpu.memory_space<smem>>
    %c0_3 = arith.constant 0 : index
    %c0_4 = arith.constant 0 : index
    %2 = vector.load %arg1[%c0_3, %c0_4] : memref<64x128xf32, #tpu.memory_space<vmem>>, vector<64x128xf32>
    %3 = vector.broadcast %0 : f32 to vector<64x128xf32>
    %4 = arith.mulf %2, %3 : vector<64x128xf32>
    %5 = vector.broadcast %1 : f32 to vector<64x128xf32>
    %6 = arith.addf %4, %5 : vector<64x128xf32>
    %c0_5 = arith.constant 0 : index
    %c0_6 = arith.constant 0 : index
    %7 = vector.load %arg4[%c0_5, %c0_6] : memref<64x128xf32, #tpu.memory_space<vmem>>, vector<64x128xf32>
    tpu.vector_store %arg4[%c0_5, %c0_6], %6 {strides = array<i32>} : memref<64x128xf32, #tpu.memory_space<vmem>>, vector<64x128xf32>,
    return
  }
  func.func @transform_0(%arg0: i32) -> (i32, i32) {
    %c0_i32 = arith.constant 0 : i32
    %c0_i32_0 = arith.constant 0 : i32
    return %arg0, %c0_i32 : i32, i32
  }
  func.func @transform_1(%arg0: i32) -> (i32, i32) {
    %c0_i32 = arith.constant 0 : i32
    %c0_i32_0 = arith.constant 0 : i32
    %c0_i32_1 = arith.constant 0 : i32
    return %c0_i32, %c0_i32_0 : i32, i32
  }
  func.func @transform_2(%arg0: i32) -> (i32, i32) {
    %c0_i32 = arith.constant 0 : i32
    %c0_i32_0 = arith.constant 0 : i32
    %c0_i32_1 = arith.constant 0 : i32
    return %c0_i32, %c0_i32_0 : i32, i32
  }
  func.func @transform_3(%arg0: i32) -> (i32, i32) {
    %c0_i32 = arith.constant 0 : i32
    %c0_i32_0 = arith.constant 0 : i32
    return %arg0, %c0_i32 : i32, i32
  }
}

</mosaic_0001>

<bundles_post_ra>
// kernel: perceptron_forward.1
= control target key start
LH: loop header
LB: loop body
LE: loop exit
PB: predicated region body
PF: predicated region fallthrough
CT: control target
= control target key end

     0   :  { %s645_s0 = inlined_call_operand.hbm [shape: f32[128,128], index: 0, kind: input, shape index: {}]   ;;  %s646_s1 = inlined_call_operand.<no memory space> [shape: f32[1,1], index: 1, kind: input, shape index: {}]   ;;  %s647_s2 = inlined_call_operand.<no memory space> [shape: f32[1,1], index: 2, kind: input, shape index: {}]   ;;  %s648_s3 = inlined_call_operand.hbm [shape: f32[128,128], index: 3, kind: output, shape index: {}]  }
   0x1   :  { %8 = sst [smem:[#allocation2]] %s646_s1 }
   0x2   :  { %9 = sst [smem:[#allocation3]] %s647_s2 }
   0x3   :  { %10 = vsyncpa [#allocation5], 0 }
   0x4   :  { %12 = vsyncpa [#allocation5 + $0x1], 0 }
   0x5   :  { %13 = vsyncpa [#allocation6], 0 }
   0x6   :  { %15 = vsyncpa [#allocation6 + $0x1], 0  ;;  %s514_s16 = smov 0   ;;  %s516_s17 = smov 0  }
   0x7   :  { %s518_s18 = smov 0   ;;  %s520_s19 = smov 0  }
   0x8 LB: > { %s535_s1 = sadd.s32 4294967295, %s482_s19   ;;  %s320_s2 = sadd.s32 4294967294, %s482_s19   ;;  %s482_s19 = sphi %s520_s19, %s658_s19   ;;  %s478_s18 = sphi %s518_s18, %s657_s18   ;;  %s474_s17 = sphi %s516_s17, %s656_s17   ;;  %s470_s16 = sphi %s514_s16, %s655_s16  }
   0x9   : > { %s539_s20 = sadd.s32 1, %s482_s19   ;;  %s28_s21 = sadd.s32 1, %s478_s18 }
   0xa   : > { %s25_s22 = ssub.s32 %s482_s19, %s539_s20  ;;  %p35_p0 = scmp.ne.s32.totalorder %s478_s18, %s474_s17 }
   0xb   : > { %p26_p1 = scmp.eq.s32.totalorder %s25_s22, 0  ;;  %p36_p2 = scmp.eq.s32.totalorder %s482_s19, 0 }
   0xc   : > { %p41_p3 = scmp.ne.s32.totalorder %s474_s17, %s470_s16  ;;  %p42_p4 = scmp.eq.s32.totalorder %s535_s1, 0 }
   0xd   : > { %s551_s23 = scalar_select %p26_p1, %s478_s18, %s28_s21  }
   0xe   : > { %p553_p5 = por %p36_p2, %p35_p0  ;;  %p557_p6 = por %p42_p4, %p41_p3 }
   0xf   : > { %p107_p7 = scmp.eq.s32.totalorder %s535_s1, 1  ;;  %p113_p8 = scmp.eq.s32.totalorder %s320_s2, 1 }
  0x10   : > { %p348_p10 = scmp.lt.s32.totalorder %s482_s19, 2  ;;  %s139_s28 = sand.u32 1, %s478_s18  }
  0x11   : > { %p564_p11 = por %p107_p7, %p35_p0  ;;  %p568_p12 = por %p113_p8, %p41_p3 }
  0x12   : > { %s334_s29 = sshll.u32 %s482_s19, 6  ;;  %s323_s30 = sshll.u32 %s139_s28, 6 }
  0x13   : > { %s148_s6 = scalar_lea.hbm %s645_s0, %s334_s29  ;;  %s143_s8 = scalar_lea.vmem [#allocation4], %s323_s30 }
  0x14   : > { %s149_s7 = sshll.u32 %s148_s6, 4  ;;  %s151_s9 = sshll.u32 %s143_s8, 4  ;;  %s150_s7 = int_to_ptr.hbm [resolvable:$true] %s149_s7  ;;  %s152_s9 = int_to_ptr.vmem [resolvable:$true] %s151_s9 }
  0x15   : > { %p579_p13 = pnand %p348_p10, %p553_p5  ;;  %p326_p0 = scmp.ge.s32.totalorder %s482_s19, 1 }
  0x16   : > { %p159_p1 = scmp.lt.s32.totalorder %s482_s19, 3  ;;  %s140_s11 = scalar_lea.sflag [#allocation5], %s139_s28 }
  0x17   : > { %s386_s12 = sshra.s32 %s150_s7, 4  ;;  %p390_p3 = pneg %p579_p13  ;;  %s387_s12 = int_to_ptr.hbm [resolvable:$true] %s386_s12 }
  0x18   : > { %s388_s13 = scalar_lea.hbm %s387_s12, 64  ;;  %s393_s2 = scalar_lea.hbm %s645_s0, 128 }
  0x19   : > { %p389_p2 = scmp.ne.s32.totalorder %s387_s12, %s388_s13  ;;  %p394_p5 = scmp.lt.s32.totalorder %s387_s12, %s645_s0 }
  0x1a   : > { %p395_p8 = scmp.lt.s32.totalorder %s393_s2, %s388_s13 }
  0x1b   : > { %p391_p4 = pnand %p390_p3, %p389_p2 }
  0x1c   : > { %p396_p10 = por %p395_p8, %p394_p5 }
  0x1d   : > { %p392_p7 = pneg %p391_p4 }
  0x1f   : > { %p397_p9 = pnand %p396_p10, %p392_p7 }
  0x21   : > { %400 = shalt.err (!%p397_p9)
}
  0x22   : > { %s484_s24 = smov 128   ;;  %s485_s28 = smov 8  }
  0x23   : > { %343 = dma.hbm_to_vmem [thread:$0]  (!%p579_p13), %s150_s7, 1024, %s152_s9, %s140_s11, %s484_s24, %s484_s24, %s485_s28  }
  0x24   : > { %p160_p2 = pnand %p326_p0, %p159_p1 }
  0x25   : > { %s600_s29 = sand.u32 (!%p160_p2), 1, %s474_s17  }
  0x26   : > { %163 = sbr.rel (%p160_p2) target bundleno = 66 (0x42), region = 32  ;;  %s327_s30 = sshll.u32 (!%p160_p2), %s600_s29, 6 }
  0x27   : > { %s166_s4 = scalar_lea.sflag (!%p160_p2), [#allocation5], %s600_s29  ;;  %s169_s5 = scalar_lea.vmem (!%p160_p2), [#allocation4], %s327_s30 }
  0x2b   : > { %461 = dma.done.wait (%p557_p6), %s166_s4, 1024  }
  0x2c   : > { %463 = vsyncadd (%p557_p6), %s166_s4, 4294966272  ;;  %s195_s6 = sld [smem:[#allocation2]]  ;;  %v197_v0 = vld [vmem:[%s169_s5] sm:$0xff]  ;;  %v198_v2 = vld [vmem:[%s169_s5 + $0x8] sm:$0xff]  ;;  %s335_s8 = sshll.u32 %s535_s1, 6 }
  0x2d   : > { %s196_s7 = sld [smem:[#allocation3]]  ;;  %v199_v3 = vld [vmem:[%s169_s5 + $0x10] sm:$0xff]  ;;  %v200_v8 = vld [vmem:[%s169_s5 + $0x18] sm:$0xff]  ;;  %v201_v9 = vld [vmem:[%s169_s5 + $0x20] sm:$0xff]  ;;  %s243_s10 = scalar_lea.hbm %s648_s3, %s335_s8 }
  0x2e   : > { %v202_v10 = vld [vmem:[%s169_s5 + $0x28] sm:$0xff]  ;;  %v203_v14 = vld [vmem:[%s169_s5 + $0x30] sm:$0xff]  ;;  %v204_v15 = vld [vmem:[%s169_s5 + $0x38] sm:$0xff]  ;;  %s192_s11 = scalar_lea.vmem [#allocation7], %s327_s30  ;;  %s246_s12 = sshll.u32 %s243_s10, 4  ;;  %s247_s12 = int_to_ptr.hbm [resolvable:$true] %s246_s12 }
  0x2f   : > { %s244_s1 = sshll.u32 %s192_s11, 4  ;;  %s232_s13 = scalar_lea.sflag [#allocation6], %s600_s29  ;;  %s245_s1 = int_to_ptr.vmem [resolvable:$true] %s244_s1 }
  0x30   : > { %s430_s14 = sshra.s32 %s247_s12, 4  ;;  %s436_s22 = scalar_lea.hbm %s648_s3, 128  ;;  %s431_s14 = int_to_ptr.hbm [resolvable:$true] %s430_s14 }
  0x31   : > { %s432_s15 = scalar_lea.hbm %s431_s14, 64  ;;  %p437_p0 = scmp.lt.s32.totalorder %s431_s14, %s648_s3 }
  0x32   : > { %v205_v1 = vstv %s195_s6  ;;  %p433_p6 = scmp.ne.s32.totalorder %s431_s14, %s432_s15  ;;  %p438_p1 = scmp.lt.s32.totalorder %s436_s22, %s432_s15 }
  0x33   : > { %v206_v4 = vmul.f32 %v205_v1, %v197_v0  ;;  %v214_v5 = vstv %s196_s7  ;;  %v207_v6 = vmul.f32 %v205_v1, %v198_v2  ;;  %v208_v7 = vmul.f32 %v205_v1, %v199_v3 }
  0x34   : > { %v209_v11 = vmul.f32 %v205_v1, %v200_v8  ;;  %v210_v12 = vmul.f32 %v205_v1, %v201_v9  ;;  %v211_v13 = vmul.f32 %v205_v1, %v202_v10  ;;  %v212_v19 = vmul.f32 %v205_v1, %v203_v14  ;;  %p434_p9 = pnand %p433_p6, %p564_p11  ;;  %p439_p3 = por %p438_p1, %p437_p0 }
  0x35   : > { %v215_v16 = vadd.f32 %v214_v5, %v206_v4  ;;  %v216_v17 = vadd.f32 %v214_v5, %v207_v6  ;;  %v217_v18 = vadd.f32 %v214_v5, %v208_v7  ;;  %v213_v21 = vmul.f32 %v205_v1, %v204_v15 }
  0x36   : > { %v218_v20 = vadd.f32 %v214_v5, %v209_v11  ;;  %v219_v22 = vadd.f32 %v214_v5, %v210_v12  ;;  %v220_v23 = vadd.f32 %v214_v5, %v211_v13  ;;  %v221_v24 = vadd.f32 %v214_v5, %v212_v19  ;;  %p435_p13 = pneg %p434_p9 }
  0x37   : > { %223 = vst [vmem:[%s192_s11] sm:$0xff] %v215_v16  ;;  %v222_v25 = vadd.f32 %v214_v5, %v213_v21 }
  0x38   : > { %224 = vst [vmem:[%s192_s11 + $0x8] sm:$0xff] %v216_v17  ;;  %p440_p4 = pnand %p439_p3, %p435_p13 }
  0x39   : > { %225 = vst [vmem:[%s192_s11 + $0x10] sm:$0xff] %v217_v18 }
  0x3a   : > { %226 = vst [vmem:[%s192_s11 + $0x18] sm:$0xff] %v218_v20 }
  0x3b   : > { %227 = vst [vmem:[%s192_s11 + $0x20] sm:$0xff] %v219_v22 }
  0x3c   : > { %228 = vst [vmem:[%s192_s11 + $0x28] sm:$0xff] %v220_v23 }
  0x3d   : > { %229 = vst [vmem:[%s192_s11 + $0x30] sm:$0xff] %v221_v24 }
  0x3e   : > { %230 = vst [vmem:[%s192_s11 + $0x38] sm:$0xff] %v222_v25 }
  0x3f   : > { %443 = shalt.err (!%p440_p4)
}
  0x40   : > { %s486_s29 = smov 128   ;;  %s487_s30 = smov 8  }
  0x41   : > { %338 = dma.vmem_to_hbm [thread:$0]  (%p564_p11), %s245_s1, 1024, %s247_s12, %s232_s13, %s486_s29, %s486_s29, %s487_s30  }
  0x42 PF: > { %s261_s4 = sand.u32 1, %s470_s16   ;;  %p654_p7 = scmp.ge.s32.totalorder %s482_s19, 2 }
  0x43   : > { %s262_s5 = scalar_lea.sflag [#allocation6], %s261_s4 }
  0x44   : > { %p345_p5 = pnand %p654_p7, %p568_p12 }
  0x46   : > { %p346_p8 = pneg %p345_p5 }
  0x48   : > { %465 = dma.done.wait (%p346_p8), %s262_s5, 1024  }
  0x49   : > { %467 = vsyncadd (%p346_p8), %s262_s5, 4294966272  ;;  %p18_p10 = scmp.ge.s32.totalorder %s539_s20, 4   ;;  %s655_s16 = smov %s474_s17 }
  0x4a   : > { %s656_s17 = smov %s478_s18  ;;  %s657_s18 = smov %s551_s23 }
  0x4b   : > { %s658_s19 = smov %s539_s20  ;;  %20 = sbr.rel (!%p18_p10) target bundleno = 8 (0x8), region = 77 }
  0x50   :  { %268 = vsyncpa [#allocation5], 1 }
  0x51   :  { %270 = vsyncpa [#allocation5 + $0x1], 1 }
  0x52   :  { %271 = vsyncpa [#allocation6], 1 }
  0x53   :  { %273 = vsyncpa [#allocation6 + $0x1], 1 }

</bundles_post_ra>
